<compile_context>
chip_gen: v7x
topology: tpu7x:2x2x1
jax: 0.10.0
libtpu: 0.0.40
codegen_flags: <defaults>
</compile_context>

<pallas_src>
import functools

import jax
import jax.numpy as jnp
from jax.experimental import pallas as pl
from jax.experimental.pallas import tpu as pltpu


def _fused_csa_kernel(x_ref, wq_ref, wk_ref, wv_ref, o_ref, *, scale):
    # x_ref  : (BG, T, E)  group of batch rows, shared embedding (no head replication)
    # wq_ref : (L, E, C)   current head's concept query projections, all layers
    # wk_ref : (L, E, C)   current head's concept key projections, all layers
    # wv_ref : (L, E, O)   current head's value projections, all layers
    # o_ref  : (BG, T, O)  current head's final-layer output
    cur = x_ref[...].astype(jnp.float32)
    n_layers = wq_ref.shape[0]
    for l in range(n_layers):  # static, unrolled; activations never leave VMEM
        wq = wq_ref[l]
        wk = wk_ref[l]
        wv = wv_ref[l]

        q = jnp.einsum("btd,dc->btc", cur, wq, preferred_element_type=jnp.float32)
        k = jnp.einsum("btd,dc->btc", cur, wk, preferred_element_type=jnp.float32)
        v = jnp.einsum("btd,do->bto", cur, wv, preferred_element_type=jnp.float32)

        # Scores: contract the concept axis of q and k directly (no .T / XLU transpose).
        s = jnp.einsum("btc,bsc->bts", q, k, preferred_element_type=jnp.float32) * scale
        s = s - jnp.max(s, axis=-1, keepdims=True)
        p = jnp.exp(s)
        # EUP approx reciprocal instead of VALU divide.
        p = p * pl.reciprocal(jnp.sum(p, axis=-1, keepdims=True), approx=True)

        cur = jnp.einsum("bts,bso->bto", p, v, preferred_element_type=jnp.float32)

    o_ref[...] = cur.astype(o_ref.dtype)


def csa_stack(emb, wq_all, wk_all, wv_all, *, block_b=None):
    """All ConceptualizedSelfAttention layers, fused in a single pallas_call.

    emb              : (B, T, E)  shared token embeddings (head axis never materialized).
    wq_all, wk_all   : (H, L, E, C)
    wv_all           : (H, L, E, O)
    Returns (B, H, T, O).
    """
    B, T, E = emb.shape
    H, L, _, C = wq_all.shape
    O = wv_all.shape[-1]
    scale = 1.0 / float(C) ** 0.5

    if block_b is None:
        block_b = min(B, 8)
    while B % block_b:  # pick a divisor of B
        block_b -= 1
    nb = B // block_b

    kernel = functools.partial(_fused_csa_kernel, scale=scale)

    return pl.pallas_call(
        kernel,
        out_shape=jax.ShapeDtypeStruct((B, H, T, O), emb.dtype),
        # head = slow axis, batch = fast axis -> per-head weight blocks stay resident.
        grid=(H, nb),
        in_specs=[
            # Same embedding block for every head -> no replicated copy in HBM.
            pl.BlockSpec((block_b, T, E), lambda h, b: (b, 0, 0)),
            pl.BlockSpec((None, L, E, C), lambda h, b: (h, 0, 0, 0)),
            pl.BlockSpec((None, L, E, C), lambda h, b: (h, 0, 0, 0)),
            pl.BlockSpec((None, L, E, O), lambda h, b: (h, 0, 0, 0)),
        ],
        out_specs=pl.BlockSpec((block_b, None, T, O), lambda h, b: (b, h, 0, 0)),
        compiler_params=pltpu.CompilerParams(
            dimension_semantics=("parallel", "parallel")),
    )(emb, wq_all, wk_all, wv_all)


def init_params(key, vocab_size, embedding_dim, c_conceptualizations,
                c_heads=1, c_layers=1):
    keys = jax.random.split(key, 1 + 3 * c_layers)
    embedding = jax.random.normal(keys[0], (vocab_size, embedding_dim),
                                  dtype=jnp.float32)
    attention_v_dim = embedding_dim
    in_dim = embedding_dim
    wq_l, wk_l, wv_l = [], [], []
    for l in range(c_layers):
        kq, kk, kv = keys[1 + 3 * l], keys[2 + 3 * l], keys[3 + 3 * l]
        sq = 1.0 / float(in_dim) ** 0.5
        wq_l.append(sq * jax.random.normal(
            kq, (c_heads, in_dim, c_conceptualizations), dtype=jnp.float32))
        wk_l.append(sq * jax.random.normal(
            kk, (c_heads, in_dim, c_conceptualizations), dtype=jnp.float32))
        wv_l.append(sq * jax.random.normal(
            kv, (c_heads, in_dim, attention_v_dim), dtype=jnp.float32))
        in_dim = attention_v_dim
    # Stack to (H, L, E, C) / (H, L, E, O) so the fused kernel gets one block per head.
    wq = jnp.stack(wq_l, axis=1)
    wk = jnp.stack(wk_l, axis=1)
    wv = jnp.stack(wv_l, axis=1)
    return dict(embedding=embedding, wq=wq, wk=wk, wv=wv, c_heads=c_heads)


def model_forward(x_tokens, params):
    """Equivalent of EruConceptualizedSelfAttentionModel.forward.

    x_tokens: (B, T) int32 token ids.
    Returns (B, c_heads, T, E) float32, matching the PyTorch head-replicated layout
    (embedded_repeated[b, h, t, e] == embedded[b, t, e]) WITHOUT materializing the
    H-fold replication in HBM.
    """
    emb = jnp.take(params["embedding"], x_tokens, axis=0)      # (B, T, E)
    return csa_stack(emb, params["wq"], params["wk"], params["wv"])


def model_forward_ref(x_tokens, params):
    """Pure-JAX reference (same math, explicit head replication, per-layer)."""
    emb = jnp.take(params["embedding"], x_tokens, axis=0)      # (B, T, E)
    B, T, E = emb.shape
    H = params["c_heads"]
    L = params["wq"].shape[1]
    cur = jnp.broadcast_to(emb[:, None, :, :], (B, H, T, E))
    for l in range(L):
        wq, wk, wv = params["wq"][:, l], params["wk"][:, l], params["wv"][:, l]
        C = wq.shape[-1]
        q = jnp.einsum("bhtd,hdc->bhtc", cur, wq)
        k = jnp.einsum("bhtd,hdc->bhtc", cur, wk)
        v = jnp.einsum("bhtd,hdo->bhto", cur, wv)
        s = jnp.einsum("bhtc,bhsc->bhts", q, k) / jnp.sqrt(jnp.float32(C))
        p = jax.nn.softmax(s, axis=-1)
        cur = jnp.einsum("bhts,bhso->bhto", p, v)
    return cur


if __name__ == "__main__":
    vocab_size = 50
    embedding_dim = 32
    c_conceptualizations = 16
    c_heads = 2
    c_layers = 2
    batch = 2
    seq = 8

    key = jax.random.PRNGKey(0)
    k_tok, k_par = jax.random.split(key)

    x = jax.random.randint(k_tok, (batch, seq), 0, vocab_size, dtype=jnp.int32)
    params = init_params(k_par, vocab_size, embedding_dim,
                         c_conceptualizations, c_heads, c_layers)

    out = model_forward(x, params)
    jax.block_until_ready(out)
    assert out.shape == (batch, c_heads, seq, embedding_dim), out.shape

    ref = model_forward_ref(x, params)
    max_err = float(jnp.max(jnp.abs(out - ref)))
    assert max_err < 5e-2, f"max abs error vs reference: {max_err}"

    print("KERNEL_OK")
</pallas_src>

<mosaic_0001>
module attributes {stable_mosaic.version = 11 : i64} {
  func.func @_fused_csa_kernel(%arg0: i32, %arg1: i32, %arg2: memref<2x8x32xf32, #tpu.memory_space<vmem>>, %arg3: memref<1x2x32x16xf32, #tpu.memory_space<vmem>>, %arg4: memref<1x2x32x16xf32, #tpu.memory_space<vmem>>, %arg5: memref<1x2x32x32xf32, #tpu.memory_space<vmem>>, %arg6: memref<2x1x8x32xf32, #tpu.memory_space<vmem>>) attributes {dimension_semantics = [#tpu.dimension_semantics<parallel>, #tpu.dimension_semantics<parallel>], iteration_bounds = array<i64: 2, 1>, scalar_prefetch = 0 : i64, scratch_operands = 0 : i64, tpu.core_type = #tpu.core_type<tc>, window_params = [{transform_indices = @transform_0, window_bounds = array<i64: 2, 8, 32>}, {transform_indices = @transform_1, window_bounds = array<i64: 1, 2, 32, 16>}, {transform_indices = @transform_2, window_bounds = array<i64: 1, 2, 32, 16>}, {transform_indices = @transform_3, window_bounds = array<i64: 1, 2, 32, 32>}, {transform_indices = @transform_4, window_bounds = array<i64: 2, 1, 8, 32>}]} {
    %c0 = arith.constant 0 : index
    %c0_0 = arith.constant 0 : index
    %c0_1 = arith.constant 0 : index
    %0 = vector.load %arg2[%c0, %c0_0, %c0_1] : memref<2x8x32xf32, #tpu.memory_space<vmem>>, vector<2x8x32xf32>
    %c0_2 = arith.constant 0 : index
    %c0_3 = arith.constant 0 : index
    %c0_4 = arith.constant 0 : index
    %c0_5 = arith.constant 0 : index
    %1 = vector.load %arg3[%c0_2, %c0_3, %c0_4, %c0_5] : memref<1x2x32x16xf32, #tpu.memory_space<vmem>>, vector<1x1x32x16xf32>
    %2 = vector.shape_cast %1 : vector<1x1x32x16xf32> to vector<32x16xf32>
    %c0_6 = arith.constant 0 : index
    %c0_7 = arith.constant 0 : index
    %c0_8 = arith.constant 0 : index
    %c0_9 = arith.constant 0 : index
    %3 = vector.load %arg4[%c0_6, %c0_7, %c0_8, %c0_9] : memref<1x2x32x16xf32, #tpu.memory_space<vmem>>, vector<1x1x32x16xf32>
    %4 = vector.shape_cast %3 : vector<1x1x32x16xf32> to vector<32x16xf32>
    %c0_10 = arith.constant 0 : index
    %c0_11 = arith.constant 0 : index
    %c0_12 = arith.constant 0 : index
    %c0_13 = arith.constant 0 : index
    %5 = vector.load %arg5[%c0_10, %c0_11, %c0_12, %c0_13] : memref<1x2x32x32xf32, #tpu.memory_space<vmem>>, vector<1x1x32x32xf32>
    %6 = vector.shape_cast %5 : vector<1x1x32x32xf32> to vector<32x32xf32>
    "tpu.trace_start"() <{level = 10 : i32, message = "btd,dc->btc"}> : () -> ()
    %cst = arith.constant dense<0.000000e+00> : vector<2x8x16xf32>
    %7 = tpu.matmul %0, %2, %cst {dimension_numbers = #tpu.dot_dimension_numbers<[2], [0], [0, 1], [1], [0, 0, 0, 1, 1, 1], [], []>} : vector<2x8x32xf32>, vector<32x16xf32>, vector<2x8x16xf32> -> vector<2x8x16xf32>
    %cst_14 = arith.constant dense<0.000000e+00> : vector<2x8x16xf32>
    %8 = tpu.matmul %0, %4, %cst_14 {dimension_numbers = #tpu.dot_dimension_numbers<[2], [0], [0, 1], [1], [0, 0, 0, 1, 1, 1], [], []>} : vector<2x8x32xf32>, vector<32x16xf32>, vector<2x8x16xf32> -> vector<2x8x16xf32>
    "tpu.trace_stop"() : () -> ()
    "tpu.trace_start"() <{level = 10 : i32, message = "btd,do->bto"}> : () -> ()
    %cst_15 = arith.constant dense<0.000000e+00> : vector<2x8x32xf32>
    %9 = tpu.matmul %0, %6, %cst_15 {dimension_numbers = #tpu.dot_dimension_numbers<[2], [0], [0, 1], [1], [0, 0, 0, 1, 1, 1], [], []>} : vector<2x8x32xf32>, vector<32x32xf32>, vector<2x8x32xf32> -> vector<2x8x32xf32>
    "tpu.trace_stop"() : () -> ()
    "tpu.trace_start"() <{level = 10 : i32, message = "btc,bsc->bts"}> : () -> ()
    %cst_16 = arith.constant dense<0.000000e+00> : vector<2x8x8xf32>
    %10 = tpu.matmul %7, %8, %cst_16 {dimension_numbers = #tpu.dot_dimension_numbers<[2], [2], [1], [1], [0, 0, 0, 1, 1, 1], [0], [0]>} : vector<2x8x16xf32>, vector<2x8x16xf32>, vector<2x8x8xf32> -> vector<2x8x8xf32>
    "tpu.trace_stop"() : () -> ()
    %cst_17 = arith.constant 2.500000e-01 : f32
    %11 = vector.broadcast %cst_17 : f32 to vector<2x8x8xf32>
    %12 = arith.mulf %10, %11 : vector<2x8x8xf32>
    %cst_18 = arith.constant dense<0xFF800000> : vector<2x8xf32>
    %13 = vector.multi_reduction <maximumf>, %12, %cst_18 [2] : vector<2x8x8xf32> to vector<2x8xf32>
    %14 = vector.shape_cast %13 : vector<2x8xf32> to vector<2x8x1xf32>
    %15 = vector.broadcast %14 : vector<2x8x1xf32> to vector<2x8x8xf32>
    %16 = arith.subf %12, %15 : vector<2x8x8xf32>
    %17 = math.exp %16 : vector<2x8x8xf32>
    %cst_19 = arith.constant dense<0.000000e+00> : vector<2x8xf32>
    %18 = vector.multi_reduction <add>, %17, %cst_19 [2] : vector<2x8x8xf32> to vector<2x8xf32>
    %19 = vector.shape_cast %18 : vector<2x8xf32> to vector<2x8x1xf32>
    %20 = tpu.reciprocal %19 {approx = true} : vector<2x8x1xf32> -> vector<2x8x1xf32>
    %21 = vector.broadcast %20 : vector<2x8x1xf32> to vector<2x8x8xf32>
    %22 = arith.mulf %17, %21 : vector<2x8x8xf32>
    "tpu.trace_start"() <{level = 10 : i32, message = "bts,bso->bto"}> : () -> ()
    %cst_20 = arith.constant dense<0.000000e+00> : vector<2x8x32xf32>
    %23 = tpu.matmul %22, %9, %cst_20 {dimension_numbers = #tpu.dot_dimension_numbers<[2], [1], [1], [2], [0, 0, 0, 1, 1, 2], [0], [0]>} : vector<2x8x8xf32>, vector<2x8x32xf32>, vector<2x8x32xf32> -> vector<2x8x32xf32>
    "tpu.trace_stop"() : () -> ()
    %c0_21 = arith.constant 0 : index
    %c1 = arith.constant 1 : index
    %c0_22 = arith.constant 0 : index
    %c0_23 = arith.constant 0 : index
    %24 = vector.load %arg3[%c0_21, %c1, %c0_22, %c0_23] : memref<1x2x32x16xf32, #tpu.memory_space<vmem>>, vector<1x1x32x16xf32>
    %25 = vector.shape_cast %24 : vector<1x1x32x16xf32> to vector<32x16xf32>
    %c0_24 = arith.constant 0 : index
    %c1_25 = arith.constant 1 : index
    %c0_26 = arith.constant 0 : index
    %c0_27 = arith.constant 0 : index
    %26 = vector.load %arg4[%c0_24, %c1_25, %c0_26, %c0_27] : memref<1x2x32x16xf32, #tpu.memory_space<vmem>>, vector<1x1x32x16xf32>
    %27 = vector.shape_cast %26 : vector<1x1x32x16xf32> to vector<32x16xf32>
    %c0_28 = arith.constant 0 : index
    %c1_29 = arith.constant 1 : index
    %c0_30 = arith.constant 0 : index
    %c0_31 = arith.constant 0 : index
    %28 = vector.load %arg5[%c0_28, %c1_29, %c0_30, %c0_31] : memref<1x2x32x32xf32, #tpu.memory_space<vmem>>, vector<1x1x32x32xf32>
    %29 = vector.shape_cast %28 : vector<1x1x32x32xf32> to vector<32x32xf32>
    "tpu.trace_start"() <{level = 10 : i32, message = "btd,dc->btc"}> : () -> ()
    %cst_32 = arith.constant dense<0.000000e+00> : vector<2x8x16xf32>
    %30 = tpu.matmul %23, %25, %cst_32 {dimension_numbers = #tpu.dot_dimension_numbers<[2], [0], [0, 1], [1], [0, 0, 0, 1, 1, 1], [], []>} : vector<2x8x32xf32>, vector<32x16xf32>, vector<2x8x16xf32> -> vector<2x8x16xf32>
    %cst_33 = arith.constant dense<0.000000e+00> : vector<2x8x16xf32>
    %31 = tpu.matmul %23, %27, %cst_33 {dimension_numbers = #tpu.dot_dimension_numbers<[2], [0], [0, 1], [1], [0, 0, 0, 1, 1, 1], [], []>} : vector<2x8x32xf32>, vector<32x16xf32>, vector<2x8x16xf32> -> vector<2x8x16xf32>
    "tpu.trace_stop"() : () -> ()
    "tpu.trace_start"() <{level = 10 : i32, message = "btd,do->bto"}> : () -> ()
    %cst_34 = arith.constant dense<0.000000e+00> : vector<2x8x32xf32>
    %32 = tpu.matmul %23, %29, %cst_34 {dimension_numbers = #tpu.dot_dimension_numbers<[2], [0], [0, 1], [1], [0, 0, 0, 1, 1, 1], [], []>} : vector<2x8x32xf32>, vector<32x32xf32>, vector<2x8x32xf32> -> vector<2x8x32xf32>
    "tpu.trace_stop"() : () -> ()
    "tpu.trace_start"() <{level = 10 : i32, message = "btc,bsc->bts"}> : () -> ()
    %cst_35 = arith.constant dense<0.000000e+00> : vector<2x8x8xf32>
    %33 = tpu.matmul %30, %31, %cst_35 {dimension_numbers = #tpu.dot_dimension_numbers<[2], [2], [1], [1], [0, 0, 0, 1, 1, 1], [0], [0]>} : vector<2x8x16xf32>, vector<2x8x16xf32>, vector<2x8x8xf32> -> vector<2x8x8xf32>
    "tpu.trace_stop"() : () -> ()
    %cst_36 = arith.constant 2.500000e-01 : f32
    %34 = vector.broadcast %cst_36 : f32 to vector<2x8x8xf32>
    %35 = arith.mulf %33, %34 : vector<2x8x8xf32>
    %cst_37 = arith.constant dense<0xFF800000> : vector<2x8xf32>
    %36 = vector.multi_reduction <maximumf>, %35, %cst_37 [2] : vector<2x8x8xf32> to vector<2x8xf32>
    %37 = vector.shape_cast %36 : vector<2x8xf32> to vector<2x8x1xf32>
    %38 = vector.broadcast %37 : vector<2x8x1xf32> to vector<2x8x8xf32>
    %39 = arith.subf %35, %38 : vector<2x8x8xf32>
    %40 = math.exp %39 : vector<2x8x8xf32>
    %cst_38 = arith.constant dense<0.000000e+00> : vector<2x8xf32>
    %41 = vector.multi_reduction <add>, %40, %cst_38 [2] : vector<2x8x8xf32> to vector<2x8xf32>
    %42 = vector.shape_cast %41 : vector<2x8xf32> to vector<2x8x1xf32>
    %43 = tpu.reciprocal %42 {approx = true} : vector<2x8x1xf32> -> vector<2x8x1xf32>
    %44 = vector.broadcast %43 : vector<2x8x1xf32> to vector<2x8x8xf32>
    %45 = arith.mulf %40, %44 : vector<2x8x8xf32>
    "tpu.trace_start"() <{level = 10 : i32, message = "bts,bso->bto"}> : () -> ()
    %cst_39 = arith.constant dense<0.000000e+00> : vector<2x8x32xf32>
    %46 = tpu.matmul %45, %32, %cst_39 {dimension_numbers = #tpu.dot_dimension_numbers<[2], [1], [1], [2], [0, 0, 0, 1, 1, 2], [0], [0]>} : vector<2x8x8xf32>, vector<2x8x32xf32>, vector<2x8x32xf32> -> vector<2x8x32xf32>
    "tpu.trace_stop"() : () -> ()
    %c0_40 = arith.constant 0 : index
    %c0_41 = arith.constant 0 : index
    %c0_42 = arith.constant 0 : index
    %c0_43 = arith.constant 0 : index
    %47 = vector.load %arg6[%c0_40, %c0_41, %c0_42, %c0_43] : memref<2x1x8x32xf32, #tpu.memory_space<vmem>>, vector<2x1x8x32xf32>
    %48 = vector.shape_cast %47 : vector<2x1x8x32xf32> to vector<2x8x32xf32>
    %49 = vector.shape_cast %46 : vector<2x8x32xf32> to vector<2x1x8x32xf32>
    tpu.vector_store %arg6[%c0_40, %c0_41, %c0_42, %c0_43], %49 {strides = array<i32>} : memref<2x1x8x32xf32, #tpu.memory_space<vmem>>, vector<2x1x8x32xf32>,
    return
  }
  func.func @transform_0(%arg0: i32, %arg1: i32) -> (i32, i32, i32) {
    %c0_i32 = arith.constant 0 : i32
    %c0_i32_0 = arith.constant 0 : i32
    %c0_i32_1 = arith.constant 0 : i32
    return %arg1, %c0_i32, %c0_i32_0 : i32, i32, i32
  }
  func.func @transform_1(%arg0: i32, %arg1: i32) -> (i32, i32, i32, i32) {
    %c0_i32 = arith.constant 0 : i32
    %c0_i32_0 = arith.constant 0 : i32
    %c0_i32_1 = arith.constant 0 : i32
    %c0_i32_2 = arith.constant 0 : i32
    return %arg0, %c0_i32, %c0_i32_0, %c0_i32_1 : i32, i32, i32, i32
  }
  func.func @transform_2(%arg0: i32, %arg1: i32) -> (i32, i32, i32, i32) {
    %c0_i32 = arith.constant 0 : i32
    %c0_i32_0 = arith.constant 0 : i32
    %c0_i32_1 = arith.constant 0 : i32
    %c0_i32_2 = arith.constant 0 : i32
    return %arg0, %c0_i32, %c0_i32_0, %c0_i32_1 : i32, i32, i32, i32
  }
  func.func @transform_3(%arg0: i32, %arg1: i32) -> (i32, i32, i32, i32) {
    %c0_i32 = arith.constant 0 : i32
    %c0_i32_0 = arith.constant 0 : i32
    %c0_i32_1 = arith.constant 0 : i32
    %c0_i32_2 = arith.constant 0 : i32
    return %arg0, %c0_i32, %c0_i32_0, %c0_i32_1 : i32, i32, i32, i32
  }
  func.func @transform_4(%arg0: i32, %arg1: i32) -> (i32, i32, i32, i32) {
    %c0_i32 = arith.constant 0 : i32
    %c0_i32_0 = arith.constant 0 : i32
    %c0_i32_1 = arith.constant 0 : i32
    return %arg1, %arg0, %c0_i32, %c0_i32_0 : i32, i32, i32, i32
  }
}

</mosaic_0001>

<bundles_post_ra>
// kernel: tpu_custom_call.1
= control target key start
LH: loop header
LB: loop body
LE: loop exit
PB: predicated region body
PF: predicated region fallthrough
CT: control target
= control target key end

     0   :  { %9 = vsyncpa [#allocation3], 0  ;;  %s2209_s0 = inlined_call_operand.vmem [shape: f32[2,8,32], index: 0, kind: input, shape index: {}]   ;;  %s2210_s1 = inlined_call_operand.vmem [shape: f32[2,2,32,16], index: 1, kind: input, shape index: {}]   ;;  %s2211_s2 = inlined_call_operand.vmem [shape: f32[2,2,32,16], index: 2, kind: input, shape index: {}]   ;;  %s2212_s3 = inlined_call_operand.vmem [shape: f32[2,2,32,32], index: 3, kind: input, shape index: {}]   ;;  %s2213_s4 = inlined_call_operand.hbm [shape: f32[2,2,8,32], index: 4, kind: output, shape index: {}]  }
   0x1   :  { %11 = vsyncpa [#allocation3 + $0x1], 0  ;;  %s1989_s15 = smov 0   ;;  %s1991_s16 = smov 0  }
   0x2   :  { %s1993_s17 = smov 0   ;;  %s1995_s18 = smov 0  }
   0x3   :  { %s1997_s19 = smov 0   ;;  %s1999_s20 = smov 0  }
   0x4 LB: > { %s1540_s21 = sadd.s32 4294967295, %s1956_s20   ;;  %s1541_s22 = sadd.s32 4294967294, %s1956_s20   ;;  %s1956_s20 = sphi %s1999_s20, %s17_s20   ;;  %s1952_s19 = sphi %s1997_s19, %s2220_s19   ;;  %s1948_s18 = sphi %s1995_s18, %s2219_s18   ;;  %s1944_s17 = sphi %s1993_s17, %s2218_s17   ;;  %s1940_s16 = sphi %s1991_s16, %s2217_s16   ;;  %s1936_s15 = sphi %s1989_s15, %s2216_s15  }
   0x5   : > { %s29_s23 = sadd.s32 1, %s1952_s19  ;;  %s142_s24 = sadd.s32 1, %s1944_s17 }
   0x6   : > { %p31_p0 = scmp.ge.s32.totalorder %s29_s23, 2  ;;  %p152_p1 = scmp.ne.s32.totalorder %s1944_s17, %s1940_s16 }
   0x7   : > { %p153_p2 = scmp.eq.s32.totalorder %s1540_s21, 1  ;;  %p158_p3 = scmp.ne.s32.totalorder %s1940_s16, %s1936_s15 }
   0x8   : > { %s2222_s23 = smov (%p31_p0, %s29_s23), 0  ;;  %p159_p5 = scmp.eq.s32.totalorder %s1541_s22, 1 }
   0x9   : > { %p2029_p4 = por %p153_p2, %p152_p1  ;;  %s138_s26 = ssub.s32 %s1952_s19, %s2222_s23 }
   0xa   : > { %p1545_p6 = scmp.ge.s32.totalorder %s1956_s20, 1  ;;  %p140_p7 = scmp.eq.s32.totalorder %s138_s26, 0 }
   0xb   : > { %p2036_p8 = por %p159_p5, %p158_p3  ;;  %p210_p9 = scmp.lt.s32.totalorder %s1956_s20, 3 }
   0xc   : > { %s2042_s28 = scalar_select %p140_p7, %s1944_s17, %s142_s24  }
   0xd   : > { %p211_p10 = pnand %p1545_p6, %p210_p9 }
   0xe   : > { %p257_p11 = scmp.lt.s32.totalorder (!%p211_p10), %s1948_s18, 1  ;;  %v273_v0 = vld [vmem:[%s2209_s0] sm:$0xff] (!%p211_p10)  ;;  %vm287_vm0 = vcmask (!%p211_p10), 261120   ;;  %v274_v13 = vld [vmem:[%s2209_s0 + $0x8] sm:$0xff] (!%p211_p10)  ;;  %v1958_v14 = vmov (!%p211_p10), 0.0   ;;  %vm1959_vm1 = vmmov (!%p211_p10), 0  }
   0xf   : > { %214 = sbr.rel (%p211_p10) target bundleno = 1973 (0x7b5), region = 36  ;;  %1667 = vmatprep.mubr.msk.f32.mxu1 (!%p211_p10), %vm287_vm0, %v273_v0  ;;  %1656 = vmatprep.mubr.msk.f32.mxu0 (!%p211_p10), %vm287_vm0, %v273_v0  ;;  %vm519_vm2 = vcmask (!%p211_p10), 130048   ;;  %vm674_vm3 = vcmask (!%p211_p10), 64512   ;;  %s248_s26 = sand.u32 (!%p211_p10), 1, %s1940_s16  }
  0x10   : > { %s1546_s29 = sshll.u32 (!%p211_p10), %s248_s26, 4  ;;  %s2163_s10 = scalar_lea.sflag (!%p211_p10), [#allocation3], %s248_s26 }
  0x11   : > { %s250_s30 = scalar_lea.vmem (!%p211_p10), [#allocation2], %s1546_s29  ;;  %s1960_s11 = smov (!%p211_p10), [#allocation2]  }
  0x16   : > { %s258_s5 = scalar_select %p257_p11, %s1948_s18, 1 }
  0x18   : > { %s2051_s6 = sshll.u32 %s258_s5, 6  ;;  %s1429_s5 = sshll.u32 %s250_s30, 4  ;;  %s2155_s5 = int_to_ptr.vmem [resolvable:$true] %s1429_s5 }
  0x19   : > { %s2057_s9 = scalar_lea.vmem %s2211_s2, %s2051_s6  ;;  %s2063_s12 = scalar_lea.vmem %s2210_s1, %s2051_s6 }
  0x1a   : > { %v279_v1 = vld [vmem:[%s2057_s9] sm:$0xff]  ;;  %v280_v2 = vld [vmem:[%s2057_s9 + $0x8] sm:$0xff]  ;;  %v281_v6 = vld [vmem:[%s2057_s9 + $0x10] sm:$0xff]  ;;  %s2096_s24 = scalar_lea.vmem %s2212_s3, %s2051_s6  ;;  %s1590_s6 = sshll.u32 %s1948_s18, 7 }
  0x1b   : > { %v275_v3 = vld [vmem:[%s2063_s12] sm:$0xff]  ;;  %v1762_v4 = vpack.c.bf16 %v280_v2, %v279_v1  ;;  %v276_v5 = vld [vmem:[%s2063_s12 + $0x8] sm:$0xff]  ;;  %v282_v7 = vld [vmem:[%s2057_s9 + $0x18] sm:$0xff]  ;;  %s1878_s18 = scalar_lea.vmem %s2155_s5, 256 }
  0x1c   : > { %v1754_v8 = vpack.c.bf16 %v276_v5, %v275_v3  ;;  %v1766_v9 = vpack.c.bf16 %v282_v7, %v281_v6  ;;  %v277_v10 = vld [vmem:[%s2063_s12 + $0x10] sm:$0xff]  ;;  %v278_v11 = vld [vmem:[%s2063_s12 + $0x18] sm:$0xff]  ;;  %v283_v19 = vld [vmem:[%s2096_s24] sm:$0xff]  ;;  %p1879_p12 = scmp.ne.s32.totalorder %s2155_s5, %s1878_s18 }
  0x1d   : > { %1763 = vmatprep.subr.bf16.mxu1 %v1762_v4  ;;  %v1758_v12 = vpack.c.bf16 %v278_v11, %v277_v10  ;;  %v284_v20 = vld [vmem:[%s2096_s24 + $0x8] sm:$0xff]  ;;  %v285_v21 = vld [vmem:[%s2096_s24 + $0x10] sm:$0xff]  ;;  %v286_v23 = vld [vmem:[%s2096_s24 + $0x18] sm:$0xff] }
  0x1e   : > { %1765 = vmatpush3.bf16.msra.mxu1 %v1762_v4  ;;  %1755 = vmatprep.subr.bf16.mxu0 %v1754_v8  ;;  %v1770_v22 = vpack.c.bf16 %v284_v20, %v283_v19  ;;  %v1774_v24 = vpack.c.bf16 %v286_v23, %v285_v21  ;;  %v1565_v45 = vld [vmem:[%s2063_s12 + $0x20] sm:$0xff]  ;;  %v1566_v46 = vld [vmem:[%s2063_s12 + $0x28] sm:$0xff]  ;;  %v1567_v57 = vld [vmem:[%s2063_s12 + $0x30] sm:$0xff]  ;;  %p1880_p13 = pnand %p1879_p12, %p2029_p4 }
  0x1f   : > { %1757 = vmatpush3.bf16.msra.mxu0 %v1754_v8  ;;  %1767 = vmatprep.subr.bf16.mxu1 %v1766_v9  ;;  %v1569_v47 = vld [vmem:[%s2057_s9 + $0x20] sm:$0xff]  ;;  %v1778_v48 = vpack.c.bf16 %v1566_v46, %v1565_v45  ;;  %v1570_v49 = vld [vmem:[%s2057_s9 + $0x28] sm:$0xff]  ;;  %v1568_v58 = vld [vmem:[%s2063_s12 + $0x38] sm:$0xff]  ;;  %s1882_s12 = sshll.u32 %s1960_s11, 4  ;;  %s1883_s12 = int_to_ptr.vmem [resolvable:$false] %s1882_s12 }
  0x20   : > { %1759 = vmatprep.subr.bf16.mxu0 %v1758_v12  ;;  %v1786_v50 = vpack.c.bf16 %v1570_v49, %v1569_v47  ;;  %v1782_v59 = vpack.c.bf16 %v1568_v58, %v1567_v57  ;;  %v1571_v60 = vld [vmem:[%s2057_s9 + $0x30] sm:$0xff]  ;;  %v1572_v61 = vld [vmem:[%s2057_s9 + $0x38] sm:$0xff]  ;;  %v1573_v63 = vld [vmem:[%s2096_s24 + $0x20] sm:$0xff]  ;;  %s2160_s9 = scalar_lea.hbm %s2213_s4, %s1590_s6  ;;  %p1881_p0 = pneg %p1880_p13 }
  0x21   : > { %v1790_v62 = vpack.c.bf16 %v1572_v61, %v1571_v60  ;;  %v1575_v3 = vld [vmem:[%s2096_s24 + $0x30] sm:$0xff]  ;;  %v1576_v4 = vld [vmem:[%s2096_s24 + $0x38] sm:$0xff]  ;;  %s1884_s13 = scalar_lea.vmem %s1883_s12, 512  ;;  %p1885_p1 = scmp.lt.s32.totalorder %s2155_s5, %s1883_s12 }
  0x22   : > { %1769 = vmatpush3.bf16.msra.mxu1 %v1766_v9  ;;  %v1798_v6 = vpack.c.bf16 %v1576_v4, %v1575_v3  ;;  %p1886_p2 = scmp.lt.s32.totalorder %s1884_s13, %s1878_s18 }
  0x23   : > { %1761 = vmatpush3.bf16.msra.mxu0 %v1758_v12  ;;  %1681 = vmatprep.subr.mxu1 %v1958_v14 }
  0x24   : > { %1771 = vmatprep.subr.bf16.mxu0 %v1770_v22  ;;  %p1887_p3 = por %p1886_p2, %p1885_p1 }
  0x25   : > { %1668 = vmatmul.mubr.msk.f32.vlgmr.msra.gmra.mrb[0].mxu1 %vm287_vm0, %v274_v13 }
  0x26   : > { %1657 = vmatmul.mubr.msk.f32.vlgmr.msra.gmra.mrb[0].mxu0 %vm287_vm0, %v274_v13  ;;  %1683 = vmatprep.mubr.msk.f32.mxu1 %vm1959_vm1, %v1958_v14  ;;  %p1888_p5 = pnand %p1887_p3, %p1881_p0 }
  0x27   : > { %1678 = vmatprep.mubr.msk.f32.mxu0 %vm287_vm0, %v273_v0  ;;  %1773 = vmatpush3.bf16.msra.mxu0 %v1770_v22  ;;  %v1574_v0 = vld [vmem:[%s2096_s24 + $0x28] sm:$0xff] }
  0x28   : > { %1775 = vmatprep.subr.bf16.mxu0 %v1774_v24  ;;  %v1794_v1 = vpack.c.bf16 %v1574_v0, %v1573_v63 }
  0x2b   : > { %1777 = vmatpush3.bf16.msra.mxu0 %v1774_v24 }
  0x2c   : > { %1691 = vmatprep.subr.mxu0 %v1958_v14 }
  0x2e   : > { %1679 = vmatmul.mubr.msk.f32.vlgmr.msra.gmra.mrb[2].mxu0 %vm287_vm0, %v274_v13 }
  0x2f   : > { %1693 = vmatprep.mubr.msk.f32.mxu0 %vm1959_vm1, %v1958_v14 }
  0xf8   : > { %v1669_v15 = vpop.f32.mrb[0].mxu1 }
  0xf9   : > { %v435_v16 = vpop.f32.mrb[1].mxu1  ;;  %v1658_v17 = vpop.f32.mrb[0].mxu0 }
  0xfa   : > { %1682 = vmatpush3.xpose.msk.msra.mxu1 %vm519_vm2, %v435_v16  ;;  %v360_v18 = vpop.f32.mrb[1].mxu0 }
  0xfb   : > { %1686 = vmatprep.subr.mxu1 %v1958_v14 }
  0xfd   : > { %1684 = vmatmul.mubr.msk.f32.vlgmr.msra.gmra.mrb[2].mxu1 %vm519_vm2, %v360_v18 }
  0xfe   : > { %1687 = vmatpush3.xpose.msk.msra.mxu1 %vm519_vm2, %v1669_v15  ;;  %1688 = vmatprep.mubr.msk.f32.mxu1 %vm1959_vm1, %v1958_v14 }
  0xff   : > { %1696 = vmatprep.subr.mxu1 %v1958_v14 }
 0x101   : > { %1689 = vmatmul.mubr.msk.f32.vlgmr.msra.gmra.mrb[4].mxu1 %vm519_vm2, %v1658_v17  ;;  %v1680_v43 = vpop.f32.mrb[2].mxu0 }
 0x102   : > { %1698 = vmatprep.mubr.msk.f32.mxu1 %vm1959_vm1, %v1958_v14  ;;  %v510_v44 = vpop.f32.mrb[3].mxu0  ;;  %1697 = vmatpush3.msra.mxu1 %v1680_v43 }
 0x103   : > { %1692 = vmatpush3.msra.mxu0 %v510_v44  ;;  %1787 = vmatprep.subr.bf16.mxu1 %v1786_v50 }
 0x104   : > { %1779 = vmatprep.subr.bf16.mxu0 %v1778_v48 }
 0x1d0   : > { %v592_v25 = vpop.f32.mrb[2].mxu1 }
 0x1d1   : > { %v672_v26 = vmul.f32 0.25, %v592_v25  ;;  %v1685_v27 = vpop.f32.mrb[3].mxu1 }
 0x1d3   : > { %v675_v28 = vsel %vm674_vm3, %v672_v26, -inf }
 0x1d4   : > { %676 = vmax.xlane.f32.xlu0 %v675_v28  ;;  %v668_v29 = vpop.f32.mrb[4].mxu1 }
 0x1d5   : > { %v673_v30 = vmul.f32 0.25, %v668_v29  ;;  %v1690_v31 = vpop.f32.mrb[5].mxu1 }
 0x1d7   : > { %v678_v32 = vsel %vm674_vm3, %v673_v30, -inf }
 0x1d8   : > { %679 = vmax.xlane.f32.xlu0 %v678_v32 }
 0x261   : > { %v677_v33 = vpop.xlane.xlu0 %676 }
 0x262   : > { %v681_v34 = vsub.f32 %v672_v26, %v677_v33 }
 0x264   : > { %v683_v35 = vmul.f32 1.442695, %v681_v34 }
 0x265   : > { %v680_v36 = vpop.xlane.xlu0 %679 }
 0x266   : > { %1862 = vpow2.f32 %v683_v35  ;;  %v682_v37 = vsub.f32 %v673_v30, %v680_v36 }
 0x268   : > { %v685_v38 = vmul.f32 1.442695, %v682_v37 }
 0x26a   : > { %1864 = vpow2.f32 %v685_v38 }
 0x270   : > { %v1863_v39 = vpop.eup %1862 }
 0x271   : > { %v687_v40 = vsel %vm674_vm3, %v1863_v39, 0.0 }
 0x272   : > { %688 = vadd.xlane.f32.xlu1 %v687_v40 }
 0x274   : > { %v1865_v41 = vpop.eup %1864 }
 0x275   : > { %v690_v42 = vsel %vm674_vm3, %v1865_v41, 0.0 }
 0x276   : > { %691 = vadd.xlane.f32.xlu1 %v690_v42 }
 0x2ff   : > { %v689_v51 = vpop.xlane.xlu1 %688 }
 0x300   : > { %1866 = vrcp.f32 %v689_v51 }
 0x303   : > { %v692_v52 = vpop.xlane.xlu1 %691 }
 0x304   : > { %1868 = vrcp.f32 %v692_v52 }
 0x30a   : > { %v1867_v53 = vpop.eup %1866 }
 0x30b   : > { %v695_v54 = vmul.f32 %v1867_v53, %v1863_v39 }
 0x30d   : > { %1694 = vmatmul.mubr.msk.f32.vlgmr.msra.gmra.mrb[4].mxu0 %vm674_vm3, %v695_v54 }
 0x30e   : > { %v1869_v55 = vpop.eup %1868  ;;  %1781 = vmatpush3.bf16.msra.mxu0 %v1778_v48 }
 0x30f   : > { %v696_v56 = vmul.f32 %v1869_v55, %v1865_v41  ;;  %1783 = vmatprep.subr.bf16.mxu0 %v1782_v59 }
 0x311   : > { %1699 = vmatmul.mubr.msk.f32.vlgmr.msra.gmra.mrb[6].mxu1 %vm674_vm3, %v696_v56 }
 0x312   : > { %1789 = vmatpush3.bf16.msra.mxu1 %v1786_v50  ;;  %1785 = vmatpush3.bf16.msra.mxu0 %v1782_v59 }
 0x313   : > { %1791 = vmatprep.subr.bf16.mxu1 %v1790_v62  ;;  %1795 = vmatprep.subr.bf16.mxu0 %v1794_v1 }
 0x316   : > { %1793 = vmatpush3.bf16.msra.mxu1 %v1790_v62 }
 0x317   : > { %1734 = vmatprep.subr.mxu1 %v1958_v14 }
 0x3e0   : > { %v766_v2 = vpop.f32.mrb[4].mxu0 }
 0x3e1   : > { %v1695_v5 = vpop.f32.mrb[5].mxu0  ;;  %1709 = vmatprep.mubr.msk.f32.mxu0 %vm287_vm0, %v766_v2  ;;  %1720 = vmatprep.mubr.msk.f32.mxu1 %vm287_vm0, %v766_v2 }
 0x3e4   : > { %v839_v7 = vpop.f32.mrb[6].mxu1 }
 0x3e5   : > { %v1700_v8 = vpop.f32.mrb[7].mxu1  ;;  %1710 = vmatmul.mubr.msk.f32.vlgmr.msra.gmra.mrb[6].mxu0 %vm287_vm0, %v839_v7  ;;  %1721 = vmatmul.mubr.msk.f32.vlgmr.msra.gmra.mrb[8].mxu1 %vm287_vm0, %v839_v7 }
 0x3e6   : > { %1797 = vmatpush3.bf16.msra.mxu0 %v1794_v1  ;;  %1731 = vmatprep.mubr.msk.f32.mxu0 %vm287_vm0, %v766_v2 }
 0x3e7   : > { %1799 = vmatprep.subr.bf16.mxu0 %v1798_v6  ;;  %1736 = vmatprep.mubr.msk.f32.mxu1 %vm1959_vm1, %v1958_v14 }
 0x3ea   : > { %1801 = vmatpush3.bf16.msra.mxu0 %v1798_v6 }
 0x3eb   : > { %1744 = vmatprep.subr.mxu0 %v1958_v14 }
 0x3ed   : > { %1732 = vmatmul.mubr.msk.f32.vlgmr.msra.gmra.mrb[8].mxu0 %vm287_vm0, %v839_v7 }
 0x3ee   : > { %1746 = vmatprep.mubr.msk.f32.mxu0 %vm1959_vm1, %v1958_v14 }
 0x4b8   : > { %v1711_v9 = vpop.f32.mrb[6].mxu0  ;;  %v1722_v10 = vpop.f32.mrb[8].mxu1 }
 0x4b9   : > { %v930_v11 = vpop.f32.mrb[7].mxu0  ;;  %v1005_v12 = vpop.f32.mrb[9].mxu1 }
 0x4ba   : > { %1735 = vmatpush3.xpose.msk.msra.mxu1 %vm519_vm2, %v1005_v12 }
 0x4bb   : > { %1739 = vmatprep.subr.mxu1 %v1958_v14 }
 0x4bd   : > { %1737 = vmatmul.mubr.msk.f32.vlgmr.msra.gmra.mrb[10].mxu1 %vm519_vm2, %v930_v11 }
 0x4be   : > { %1740 = vmatpush3.xpose.msk.msra.mxu1 %vm519_vm2, %v1722_v10  ;;  %1741 = vmatprep.mubr.msk.f32.mxu1 %vm1959_vm1, %v1958_v14 }
 0x4bf   : > { %1749 = vmatprep.subr.mxu1 %v1958_v14 }
 0x4c0   : > { %v1733_v13 = vpop.f32.mrb[8].mxu0 }
 0x4c1   : > { %v1080_v15 = vpop.f32.mrb[9].mxu0  ;;  %1742 = vmatmul.mubr.msk.f32.vlgmr.msra.gmra.mrb[12].mxu1 %vm519_vm2, %v1711_v9 }
 0x4c2   : > { %1745 = vmatpush3.msra.mxu0 %v1080_v15  ;;  %1750 = vmatpush3.msra.mxu1 %v1733_v13 }
 0x4c3   : > { %1751 = vmatprep.mubr.msk.f32.mxu1 %vm1959_vm1, %v1958_v14 }
 0x590   : > { %v1161_v16 = vpop.f32.mrb[10].mxu1 }
 0x591   : > { %v1241_v17 = vmul.f32 0.25, %v1161_v16  ;;  %v1738_v18 = vpop.f32.mrb[11].mxu1 }
 0x593   : > { %v1243_v19 = vsel %vm674_vm3, %v1241_v17, -inf }
 0x594   : > { %1244 = vmax.xlane.f32.xlu0 %v1243_v19  ;;  %v1237_v20 = vpop.f32.mrb[12].mxu1 }
 0x595   : > { %v1242_v21 = vmul.f32 0.25, %v1237_v20  ;;  %v1743_v22 = vpop.f32.mrb[13].mxu1 }
 0x597   : > { %v1246_v23 = vsel %vm674_vm3, %v1242_v21, -inf }
 0x598   : > { %1247 = vmax.xlane.f32.xlu1 %v1246_v23 }
 0x621   : > { %v1245_v24 = vpop.xlane.xlu0 %1244 }
 0x622   : > { %v1249_v25 = vsub.f32 %v1241_v17, %v1245_v24 }
 0x624   : > { %v1251_v26 = vmul.f32 1.442695, %v1249_v25 }
 0x625   : > { %v1248_v27 = vpop.xlane.xlu1 %1247 }
 0x626   : > { %1870 = vpow2.f32 %v1251_v26  ;;  %v1250_v28 = vsub.f32 %v1242_v21, %v1248_v27 }
 0x628   : > { %v1253_v29 = vmul.f32 1.442695, %v1250_v28 }
 0x62a   : > { %1872 = vpow2.f32 %v1253_v29 }
 0x630   : > { %v1871_v14 = vpop.eup %1870 }
 0x631   : > { %v1255_v30 = vsel %vm674_vm3, %v1871_v14, 0.0 }
 0x632   : > { %1256 = vadd.xlane.f32.xlu0 %v1255_v30 }
 0x634   : > { %v1873_v31 = vpop.eup %1872 }
 0x635   : > { %v1258_v32 = vsel %vm674_vm3, %v1873_v31, 0.0 }
 0x636   : > { %1259 = vadd.xlane.f32.xlu1 %v1258_v32 }
 0x6bf   : > { %v1257_v33 = vpop.xlane.xlu0 %1256 }
 0x6c0   : > { %1874 = vrcp.f32 %v1257_v33 }
 0x6c3   : > { %v1260_v34 = vpop.xlane.xlu1 %1259 }
 0x6c4   : > { %1876 = vrcp.f32 %v1260_v34 }
 0x6ca   : > { %v1875_v35 = vpop.eup %1874 }
 0x6cb   : > { %v1263_v36 = vmul.f32 %v1875_v35, %v1871_v14 }
 0x6cd   : > { %1747 = vmatmul.mubr.msk.f32.vlgmr.msra.gmra.mrb[10].mxu0 %vm674_vm3, %v1263_v36 }
 0x6ce   : > { %v1877_v37 = vpop.eup %1876 }
 0x6cf   : > { %v1264_v38 = vmul.f32 %v1877_v37, %v1873_v31 }
 0x6d1   : > { %1752 = vmatmul.mubr.msk.f32.vlgmr.msra.gmra.mrb[14].mxu1 %vm674_vm3, %v1264_v38 }
 0x7a0   : > { %v1334_v39 = vpop.f32.mrb[10].mxu0 }
 0x7a1   : > { %1411 = vst.msk [vmem:[%s250_s30] sm:$0xff] %vm287_vm0, %v1334_v39  ;;  %v1748_v40 = vpop.f32.mrb[11].mxu0 }
 0x7a4   : > { %v1407_v41 = vpop.f32.mrb[14].mxu1 }
 0x7a5   : > { %1412 = vst.msk [vmem:[%s250_s30 + $0x8] sm:$0xff] %vm287_vm0, %v1407_v41  ;;  %v1753_v42 = vpop.f32.mrb[15].mxu1 }
 0x7a6   : > { %1891 = shalt.err (!%p1888_p5)
}
 0x7a7   : > { %s1892_s14 = scalar_lea.hbm %s2160_s9, 256  ;;  %s1896_s24 = scalar_lea.hbm %s2213_s4, 512 }
 0x7a8   : > { %p1893_p6 = scmp.ne.s32.totalorder %s2160_s9, %s1892_s14  ;;  %p1897_p10 = scmp.lt.u32.totalorder %s2160_s9, %s2213_s4 }
 0x7a9   : > { %p1898_p11 = scmp.lt.u32.totalorder %s1896_s24, %s1892_s14  ;;  %p1900_p13 = scmp.lt.u32.totalorder %s1892_s14, %s2160_s9 }
 0x7aa   : > { %p1894_p7 = pnand %p1893_p6, %p2029_p4 }
 0x7ab   : > { %p1899_p12 = por %p1898_p11, %p1897_p10 }
 0x7ac   : > { %p1895_p9 = pneg %p1894_p7 }
 0x7ad   : > { %p1901_p0 = por %p1900_p13, %p1899_p12 }
 0x7af   : > { %p1902_p1 = pnand %p1901_p0, %p1895_p9 }
 0x7b1   : > { %1905 = shalt.err (!%p1902_p1)
}
 0x7b2   : > { %s1961_s30 = smov 128   ;;  %s1962_s6 = smov 256  }
 0x7b3   : > { %s1963_s7 = smov 8  }
 0x7b4   : > { %1802 = dma.vmem_to_hbm [thread:$0]  (%p2029_p4), %s2155_s5, 256, %s2160_s9, %s2163_s10, %s1961_s30, %s1962_s6, %s1963_s7  }
 0x7b5 PF: > { %p1808_p2 = scmp.ge.s32.totalorder %s1956_s20, 2  ;;  %s1444_s8 = sand.u32 1, %s1936_s15  }
 0x7b6   : > { %s1445_s18 = scalar_lea.sflag [#allocation3], %s1444_s8 }
 0x7b7   : > { %p1805_p3 = pnand %p1808_p2, %p2036_p8 }
 0x7b9   : > { %1931 = dma.done.wait (!%p1805_p3), %s1445_s18, 256  }
 0x7ba   : > { %1933 = vsyncadd (!%p1805_p3), %s1445_s18, 4294967040  ;;  %s17_s20 = sadd.s32 1, %s1956_s20   ;;  %s2216_s15 = smov %s1940_s16 }
 0x7bb   : > { %p14_p5 = scmp.ge.s32.totalorder %s17_s20, 4   ;;  %s2217_s16 = smov %s1944_s17 }
 0x7bc   : > { %s2218_s17 = smov %s2042_s28  ;;  %s2219_s18 = smov %s1952_s19 }
 0x7bd   : > { %s2220_s19 = smov %s2222_s23  ;;  %16 = sbr.rel (!%p14_p5) target bundleno = 4 (0x4), region = 83 }
 0x7c4   :  { %1450 = vsyncpa [#allocation3], 1 }
 0x7c5   :  { %1452 = vsyncpa [#allocation3 + $0x1], 1 }

</bundles_post_ra>
